<compile_context>
chip_gen: v6e
topology: v6e:2x2x1
jax: 0.10.0
libtpu: 0.0.40
codegen_flags: <defaults>
</compile_context>

<pallas_src>
import functools

import numpy as np
import jax
import jax.numpy as jnp
from jax.experimental import pallas as pl
from jax.experimental.pallas import tpu as pltpu


# --------------------------------------------------------------------------
# Pallas kernel: multi-head self-attention for a single batch element.
# --------------------------------------------------------------------------
def _mha_kernel(x_ref, mask_ref, wqkv_ref, bqkv_ref, wo_ref, bo_ref, out_ref,
                *, num_heads):
    x = x_ref[...]                      # [L, E]  (batch dim squeezed), bf16
    add_mask = mask_ref[...]            # [1, L]  f32 additive key-padding mask
    L, E = x.shape
    hd = E // num_heads

    # Fused QKV projection: one MXU pass, bf16 operands, f32 accumulation.
    # (1/sqrt(hd) is already folded into the Wq / bq slice of Wqkv.)
    qkv = jnp.dot(x.astype(jnp.bfloat16), wqkv_ref[...],
                  preferred_element_type=jnp.float32) + bqkv_ref[...]   # [L, 3E] f32
    q = qkv[:, :E]
    k = qkv[:, E:2 * E]
    v = qkv[:, 2 * E:]

    # Per-head attention.  Matmul operands go to bf16; the mask add, max, exp
    # and row-sum stay f32 so the -1e30 key-padding mask cannot overflow.
    ctx_heads = []
    for h in range(num_heads):
        qh = q[:, h * hd:(h + 1) * hd].astype(jnp.bfloat16)    # [L, hd]
        kh = k[:, h * hd:(h + 1) * hd].astype(jnp.bfloat16)    # [L, hd]
        vh = v[:, h * hd:(h + 1) * hd].astype(jnp.bfloat16)    # [L, hd]
        s = jnp.einsum("qd,kd->qk", qh, kh,
                       preferred_element_type=jnp.float32) + add_mask   # [L, L] f32
        m = jnp.max(s, axis=-1, keepdims=True)
        e = jnp.exp(s - m)
        inv_denom = pl.reciprocal(jnp.sum(e, axis=-1, keepdims=True), approx=True)
        p = (e * inv_denom).astype(jnp.bfloat16)               # [L, L]
        ctx_heads.append(jnp.dot(p, vh, preferred_element_type=jnp.float32))
    ctx = jnp.concatenate(ctx_heads, axis=-1)                  # [L, E] f32

    # Single full-width output projection (replaces per-head K=hd folds).
    o = jnp.dot(ctx.astype(jnp.bfloat16), wo_ref[...],
                preferred_element_type=jnp.float32) + bo_ref[...]
    out_ref[...] = o.astype(out_ref.dtype)


def padded_mha(padded, add_mask, kparams, num_heads):
    """padded: [B, L, E] bf16; add_mask: [B, 1, L] f32 (0 or -1e30)."""
    B, L, E = padded.shape
    kernel = functools.partial(_mha_kernel, num_heads=num_heads)

    # Rough per-program VMEM footprint -> explicit scoped-VMEM limit.
    est = (2 * L * E * 2            # x, double-buffered, bf16
           + 2 * L * E * 4          # out, double-buffered, f32
           + L * 3 * E * 4          # fused qkv, f32
           + 3 * L * L * 4          # scores / exp / probs for the live head
           + L * E * 4              # concatenated context, f32
           + (3 * E * E + E * E) * 2 + 4 * E * 4 + L * 4)
    vmem_limit = int(min(100 * 2 ** 20, max(8 * 2 ** 20, 4 * est)))

    return pl.pallas_call(
        kernel,
        out_shape=jax.ShapeDtypeStruct((B, L, E), jnp.float32),
        grid=(B,),
        in_specs=[
            pl.BlockSpec((pl.Squeezed(), L, E), lambda b: (b, 0, 0)),   # features
            pl.BlockSpec((pl.Squeezed(), 1, L), lambda b: (b, 0, 0)),   # key mask
            pl.BlockSpec((E, 3 * E), lambda b: (0, 0)),                 # Wqkv (bf16)
            pl.BlockSpec((1, 3 * E), lambda b: (0, 0)),                 # bqkv (f32)
            pl.BlockSpec((E, E), lambda b: (0, 0)),                     # Wo (bf16)
            pl.BlockSpec((1, E), lambda b: (0, 0)),                     # bo (f32)
        ],
        out_specs=pl.BlockSpec((pl.Squeezed(), L, E), lambda b: (b, 0, 0)),
        compiler_params=pltpu.CompilerParams(
            dimension_semantics=("parallel",),
            vmem_limit_bytes=vmem_limit),
    )(padded, add_mask,
      kparams["wqkv"], kparams["bqkv"], kparams["wo"], kparams["bo"])


# --------------------------------------------------------------------------
# Device-side pipeline: ragged -> padded -> kernel -> un-pad (all under jit).
# --------------------------------------------------------------------------
@functools.partial(jax.jit, static_argnames=("bs", "L", "num_heads"))
def _concat_attention_device(batch_ids, features, kparams, *, bs, L, num_heads):
    N, E = features.shape

    # ragged -> padded packing via scatter (order preserved within each batch).
    order = jnp.argsort(batch_ids, stable=True)
    bid_sorted = batch_ids[order]
    counts = jnp.bincount(batch_ids, length=bs)
    starts = jnp.concatenate(
        [jnp.zeros((1,), counts.dtype), jnp.cumsum(counts)[:-1]])
    pos_sorted = jnp.arange(N, dtype=counts.dtype) - starts[bid_sorted]
    flat_idx = bid_sorted * L + pos_sorted                      # row in [bs*L, E]

    padded = jnp.zeros((bs * L, E), jnp.float32).at[flat_idx].set(features[order])
    padded = padded.reshape(bs, L, E).astype(jnp.bfloat16)      # bf16 activations

    lane = jnp.arange(L)
    add_mask = jnp.where(lane[None, :] < counts[:, None], 0.0, -1e30)
    add_mask = add_mask.astype(jnp.float32)[:, None, :]         # [bs, 1, L]

    padded_out = padded_mha(padded, add_mask, kparams, num_heads)  # [bs, L, E] f32

    # un-pad back to "concatenated per batch" ordering (matches PyTorch module).
    return padded_out.reshape(bs * L, E)[flat_idx]


def concat_attention(batch_ids, features, kparams, num_heads):
    """batch_ids: [N] ints (host ok), features: [N, E] f32 -> [N, E] f32."""
    batch_ids_np = np.asarray(batch_ids)
    counts = np.bincount(batch_ids_np)
    bs = int(len(counts))
    L = max(8, int(-(-int(counts.max()) // 8) * 8))   # pad seq len to sublane mult
    return _concat_attention_device(
        jnp.asarray(batch_ids_np, jnp.int32),
        jnp.asarray(features, jnp.float32),
        kparams, bs=bs, L=L, num_heads=num_heads)


# --------------------------------------------------------------------------
# Pure-JAX f32 reference (unfused math) for a sanity check.
# --------------------------------------------------------------------------
def _ref_padded_mha(padded, add_mask, raw, num_heads):
    B, L, E = padded.shape
    hd = E // num_heads
    scale = 1.0 / np.sqrt(hd)
    q = padded @ raw["wq_t"] + raw["bq"]
    k = padded @ raw["wk_t"] + raw["bk"]
    v = padded @ raw["wv_t"] + raw["bv"]
    q = q.reshape(B, L, num_heads, hd).transpose(0, 2, 1, 3) * scale
    k = k.reshape(B, L, num_heads, hd).transpose(0, 2, 1, 3)
    v = v.reshape(B, L, num_heads, hd).transpose(0, 2, 1, 3)
    s = jnp.einsum("bhqd,bhkd->bhqk", q, k) + add_mask[:, None, :, :]
    p = jax.nn.softmax(s, axis=-1)
    ctx = jnp.einsum("bhqk,bhkd->bhqd", p, v).transpose(0, 2, 1, 3).reshape(B, L, E)
    return ctx @ raw["wo_t"] + raw["bo"]


if __name__ == "__main__":
    embed_dim = 32
    num_heads = 4
    hd = embed_dim // num_heads
    N = 13                      # total number of sparse points
    bs = 2

    key = jax.random.PRNGKey(0)
    k_feat, k_w1, k_b1, k_w2, k_b2 = jax.random.split(key, 5)

    # deterministic "checkpoint-free" parameter init (nn.MultiheadAttention shapes)
    s = 1.0 / np.sqrt(embed_dim)
    in_proj_w = jax.random.uniform(k_w1, (3 * embed_dim, embed_dim),
                                   jnp.float32, -s, s)
    in_proj_b = jax.random.uniform(k_b1, (3 * embed_dim,), jnp.float32, -s, s)
    out_proj_w = jax.random.uniform(k_w2, (embed_dim, embed_dim),
                                    jnp.float32, -s, s)
    out_proj_b = jax.random.uniform(k_b2, (embed_dim,), jnp.float32, -s, s)

    # PyTorch computes y = x @ W.T + b, so pre-transpose the weights.
    wq_t = in_proj_w[:embed_dim].T
    wk_t = in_proj_w[embed_dim:2 * embed_dim].T
    wv_t = in_proj_w[2 * embed_dim:].T
    bq = in_proj_b[:embed_dim]
    bk = in_proj_b[embed_dim:2 * embed_dim]
    bv = in_proj_b[2 * embed_dim:]
    scale = 1.0 / np.sqrt(hd)

    # Kernel params: fused QKV with scale folded into Wq/bq; bf16 matmul weights.
    kparams = {
        "wqkv": jnp.concatenate([wq_t * scale, wk_t, wv_t], axis=1).astype(jnp.bfloat16),
        "bqkv": jnp.concatenate([bq * scale, bk, bv]).reshape(1, 3 * embed_dim)
                 .astype(jnp.float32),
        "wo": out_proj_w.T.astype(jnp.bfloat16),
        "bo": out_proj_b.reshape(1, embed_dim).astype(jnp.float32),
    }
    # Raw f32 params for the independent reference.
    raw = {"wq_t": wq_t, "wk_t": wk_t, "wv_t": wv_t,
           "bq": bq.reshape(1, -1), "bk": bk.reshape(1, -1), "bv": bv.reshape(1, -1),
           "wo_t": out_proj_w.T, "bo": out_proj_b.reshape(1, -1)}

    # ragged inputs: interleaved batch ids (6 points in batch 0, 7 in batch 1)
    batch_ids = np.array([0, 1, 0, 0, 1, 1, 0, 1, 0, 0, 1, 1, 1], dtype=np.int32)
    features = jax.random.normal(k_feat, (N, embed_dim), jnp.float32)

    out = concat_attention(batch_ids, features, kparams, num_heads)
    out = jax.block_until_ready(out)
    assert out.shape == (N, embed_dim)

    # sanity check against pure-JAX f32 reference (host-side padding path)
    counts = np.bincount(batch_ids)
    L = max(8, int(-(-int(counts.max()) // 8) * 8))
    padded = np.zeros((bs, L, embed_dim), dtype=np.float32)
    add_mask = np.full((bs, 1, L), -1e30, dtype=np.float32)
    for b in range(bs):
        ids = np.nonzero(batch_ids == b)[0]
        padded[b, :len(ids), :] = np.asarray(features)[ids]
        add_mask[b, 0, :len(ids)] = 0.0
    ref_padded = _ref_padded_mha(jnp.asarray(padded), jnp.asarray(add_mask),
                                 raw, num_heads)
    ref_rows = []
    for b in range(bs):
        n = int(counts[b])
        ref_rows.append(np.asarray(ref_padded)[b, :n, :])
    ref = np.concatenate(ref_rows, axis=0)

    # bf16 matmul operands + approx reciprocal => looser tolerance than pure f32
    np.testing.assert_allclose(np.asarray(out), ref, rtol=2e-2, atol=2e-2)

    print("KERNEL_OK")
</pallas_src>

<mosaic_0001>
module attributes {stable_mosaic.version = 11 : i64} {
  func.func @_mha_kernel(%arg0: i32, %arg1: memref<1x8x32xbf16, #tpu.memory_space<vmem>>, %arg2: memref<1x1x8xf32, #tpu.memory_space<vmem>>, %arg3: memref<32x96xbf16, #tpu.memory_space<vmem>>, %arg4: memref<1x96xf32, #tpu.memory_space<vmem>>, %arg5: memref<32x32xbf16, #tpu.memory_space<vmem>>, %arg6: memref<1x32xf32, #tpu.memory_space<vmem>>, %arg7: memref<1x8x32xf32, #tpu.memory_space<vmem>>) attributes {dimension_semantics = [#tpu.dimension_semantics<parallel>], iteration_bounds = array<i64: 2>, scalar_prefetch = 0 : i64, scratch_operands = 0 : i64, tpu.core_type = #tpu.core_type<tc>, window_params = [{transform_indices = @transform_0, window_bounds = array<i64: 1, 8, 32>}, {transform_indices = @transform_1, window_bounds = array<i64: 1, 1, 8>}, {pipeline_mode = #tpu.pipeline_mode<synchronous>, transform_indices = @transform_2, window_bounds = array<i64: 32, 96>}, {pipeline_mode = #tpu.pipeline_mode<synchronous>, transform_indices = @transform_3, window_bounds = array<i64: 1, 96>}, {pipeline_mode = #tpu.pipeline_mode<synchronous>, transform_indices = @transform_4, window_bounds = array<i64: 32, 32>}, {pipeline_mode = #tpu.pipeline_mode<synchronous>, transform_indices = @transform_5, window_bounds = array<i64: 1, 32>}, {transform_indices = @transform_6, window_bounds = array<i64: 1, 8, 32>}]} {
    %c0 = arith.constant 0 : index
    %c0_0 = arith.constant 0 : index
    %c0_1 = arith.constant 0 : index
    %0 = vector.load %arg1[%c0, %c0_0, %c0_1] : memref<1x8x32xbf16, #tpu.memory_space<vmem>>, vector<1x8x32xbf16>
    %1 = vector.shape_cast %0 : vector<1x8x32xbf16> to vector<8x32xbf16>
    %c0_2 = arith.constant 0 : index
    %c0_3 = arith.constant 0 : index
    %c0_4 = arith.constant 0 : index
    %2 = vector.load %arg2[%c0_2, %c0_3, %c0_4] : memref<1x1x8xf32, #tpu.memory_space<vmem>>, vector<1x1x8xf32>
    %3 = vector.shape_cast %2 : vector<1x1x8xf32> to vector<1x8xf32>
    %c0_5 = arith.constant 0 : index
    %c0_6 = arith.constant 0 : index
    %4 = vector.load %arg3[%c0_5, %c0_6] : memref<32x96xbf16, #tpu.memory_space<vmem>>, vector<32x96xbf16>
    %cst = arith.constant dense<0.000000e+00> : vector<8x96xf32>
    %5 = tpu.matmul %1, %4, %cst {dimension_numbers = #tpu.dot_dimension_numbers<[1], [0], [0], [1], [0, 0, 1, 1], [], []>} : vector<8x32xbf16>, vector<32x96xbf16>, vector<8x96xf32> -> vector<8x96xf32>
    %c0_7 = arith.constant 0 : index
    %c0_8 = arith.constant 0 : index
    %6 = vector.load %arg4[%c0_7, %c0_8] : memref<1x96xf32, #tpu.memory_space<vmem>>, vector<1x96xf32>
    %7 = vector.broadcast %6 : vector<1x96xf32> to vector<8x96xf32>
    %8 = arith.addf %5, %7 : vector<8x96xf32>
    %9 = vector.extract_strided_slice %8 {offsets = [0, 0], sizes = [8, 32], strides = [1, 1]} : vector<8x96xf32> to vector<8x32xf32>
    %10 = vector.extract_strided_slice %8 {offsets = [0, 32], sizes = [8, 32], strides = [1, 1]} : vector<8x96xf32> to vector<8x32xf32>
    %11 = vector.extract_strided_slice %8 {offsets = [0, 64], sizes = [8, 32], strides = [1, 1]} : vector<8x96xf32> to vector<8x32xf32>
    %12 = vector.extract_strided_slice %9 {offsets = [0, 0], sizes = [8, 8], strides = [1, 1]} : vector<8x32xf32> to vector<8x8xf32>
    %13 = arith.truncf %12 : vector<8x8xf32> to vector<8x8xbf16>
    %14 = vector.extract_strided_slice %10 {offsets = [0, 0], sizes = [8, 8], strides = [1, 1]} : vector<8x32xf32> to vector<8x8xf32>
    %15 = arith.truncf %14 : vector<8x8xf32> to vector<8x8xbf16>
    %16 = vector.extract_strided_slice %11 {offsets = [0, 0], sizes = [8, 8], strides = [1, 1]} : vector<8x32xf32> to vector<8x8xf32>
    %17 = arith.truncf %16 : vector<8x8xf32> to vector<8x8xbf16>
    "tpu.trace_start"() <{level = 10 : i32, message = "qd,kd->qk"}> : () -> ()
    %cst_9 = arith.constant dense<0.000000e+00> : vector<8x8xf32>
    %18 = tpu.matmul %13, %15, %cst_9 {dimension_numbers = #tpu.dot_dimension_numbers<[1], [1], [0], [0], [0, 0, 1, 0], [], []>} : vector<8x8xbf16>, vector<8x8xbf16>, vector<8x8xf32> -> vector<8x8xf32>
    "tpu.trace_stop"() : () -> ()
    %19 = vector.broadcast %3 : vector<1x8xf32> to vector<8x8xf32>
    %20 = arith.addf %18, %19 : vector<8x8xf32>
    %cst_10 = arith.constant dense<0xFF800000> : vector<8xf32>
    %21 = vector.multi_reduction <maximumf>, %20, %cst_10 [1] : vector<8x8xf32> to vector<8xf32>
    %22 = vector.shape_cast %21 : vector<8xf32> to vector<8x1xf32>
    %23 = vector.broadcast %22 : vector<8x1xf32> to vector<8x8xf32>
    %24 = arith.subf %20, %23 : vector<8x8xf32>
    %25 = math.exp %24 : vector<8x8xf32>
    %cst_11 = arith.constant dense<0.000000e+00> : vector<8xf32>
    %26 = vector.multi_reduction <add>, %25, %cst_11 [1] : vector<8x8xf32> to vector<8xf32>
    %27 = vector.shape_cast %26 : vector<8xf32> to vector<8x1xf32>
    %28 = tpu.reciprocal %27 {approx = true} : vector<8x1xf32> -> vector<8x1xf32>
    %29 = vector.broadcast %28 : vector<8x1xf32> to vector<8x8xf32>
    %30 = arith.mulf %25, %29 : vector<8x8xf32>
    %31 = arith.truncf %30 : vector<8x8xf32> to vector<8x8xbf16>
    %cst_12 = arith.constant dense<0.000000e+00> : vector<8x8xf32>
    %32 = tpu.matmul %31, %17, %cst_12 {dimension_numbers = #tpu.dot_dimension_numbers<[1], [0], [0], [1], [0, 0, 1, 1], [], []>} : vector<8x8xbf16>, vector<8x8xbf16>, vector<8x8xf32> -> vector<8x8xf32>
    %33 = vector.extract_strided_slice %9 {offsets = [0, 8], sizes = [8, 8], strides = [1, 1]} : vector<8x32xf32> to vector<8x8xf32>
    %34 = arith.truncf %33 : vector<8x8xf32> to vector<8x8xbf16>
    %35 = vector.extract_strided_slice %10 {offsets = [0, 8], sizes = [8, 8], strides = [1, 1]} : vector<8x32xf32> to vector<8x8xf32>
    %36 = arith.truncf %35 : vector<8x8xf32> to vector<8x8xbf16>
    %37 = vector.extract_strided_slice %11 {offsets = [0, 8], sizes = [8, 8], strides = [1, 1]} : vector<8x32xf32> to vector<8x8xf32>
    %38 = arith.truncf %37 : vector<8x8xf32> to vector<8x8xbf16>
    "tpu.trace_start"() <{level = 10 : i32, message = "qd,kd->qk"}> : () -> ()
    %cst_13 = arith.constant dense<0.000000e+00> : vector<8x8xf32>
    %39 = tpu.matmul %34, %36, %cst_13 {dimension_numbers = #tpu.dot_dimension_numbers<[1], [1], [0], [0], [0, 0, 1, 0], [], []>} : vector<8x8xbf16>, vector<8x8xbf16>, vector<8x8xf32> -> vector<8x8xf32>
    "tpu.trace_stop"() : () -> ()
    %40 = vector.broadcast %3 : vector<1x8xf32> to vector<8x8xf32>
    %41 = arith.addf %39, %40 : vector<8x8xf32>
    %cst_14 = arith.constant dense<0xFF800000> : vector<8xf32>
    %42 = vector.multi_reduction <maximumf>, %41, %cst_14 [1] : vector<8x8xf32> to vector<8xf32>
    %43 = vector.shape_cast %42 : vector<8xf32> to vector<8x1xf32>
    %44 = vector.broadcast %43 : vector<8x1xf32> to vector<8x8xf32>
    %45 = arith.subf %41, %44 : vector<8x8xf32>
    %46 = math.exp %45 : vector<8x8xf32>
    %cst_15 = arith.constant dense<0.000000e+00> : vector<8xf32>
    %47 = vector.multi_reduction <add>, %46, %cst_15 [1] : vector<8x8xf32> to vector<8xf32>
    %48 = vector.shape_cast %47 : vector<8xf32> to vector<8x1xf32>
    %49 = tpu.reciprocal %48 {approx = true} : vector<8x1xf32> -> vector<8x1xf32>
    %50 = vector.broadcast %49 : vector<8x1xf32> to vector<8x8xf32>
    %51 = arith.mulf %46, %50 : vector<8x8xf32>
    %52 = arith.truncf %51 : vector<8x8xf32> to vector<8x8xbf16>
    %cst_16 = arith.constant dense<0.000000e+00> : vector<8x8xf32>
    %53 = tpu.matmul %52, %38, %cst_16 {dimension_numbers = #tpu.dot_dimension_numbers<[1], [0], [0], [1], [0, 0, 1, 1], [], []>} : vector<8x8xbf16>, vector<8x8xbf16>, vector<8x8xf32> -> vector<8x8xf32>
    %54 = vector.extract_strided_slice %9 {offsets = [0, 16], sizes = [8, 8], strides = [1, 1]} : vector<8x32xf32> to vector<8x8xf32>
    %55 = arith.truncf %54 : vector<8x8xf32> to vector<8x8xbf16>
    %56 = vector.extract_strided_slice %10 {offsets = [0, 16], sizes = [8, 8], strides = [1, 1]} : vector<8x32xf32> to vector<8x8xf32>
    %57 = arith.truncf %56 : vector<8x8xf32> to vector<8x8xbf16>
    %58 = vector.extract_strided_slice %11 {offsets = [0, 16], sizes = [8, 8], strides = [1, 1]} : vector<8x32xf32> to vector<8x8xf32>
    %59 = arith.truncf %58 : vector<8x8xf32> to vector<8x8xbf16>
    "tpu.trace_start"() <{level = 10 : i32, message = "qd,kd->qk"}> : () -> ()
    %cst_17 = arith.constant dense<0.000000e+00> : vector<8x8xf32>
    %60 = tpu.matmul %55, %57, %cst_17 {dimension_numbers = #tpu.dot_dimension_numbers<[1], [1], [0], [0], [0, 0, 1, 0], [], []>} : vector<8x8xbf16>, vector<8x8xbf16>, vector<8x8xf32> -> vector<8x8xf32>
    "tpu.trace_stop"() : () -> ()
    %61 = vector.broadcast %3 : vector<1x8xf32> to vector<8x8xf32>
    %62 = arith.addf %60, %61 : vector<8x8xf32>
    %cst_18 = arith.constant dense<0xFF800000> : vector<8xf32>
    %63 = vector.multi_reduction <maximumf>, %62, %cst_18 [1] : vector<8x8xf32> to vector<8xf32>
    %64 = vector.shape_cast %63 : vector<8xf32> to vector<8x1xf32>
    %65 = vector.broadcast %64 : vector<8x1xf32> to vector<8x8xf32>
    %66 = arith.subf %62, %65 : vector<8x8xf32>
    %67 = math.exp %66 : vector<8x8xf32>
    %cst_19 = arith.constant dense<0.000000e+00> : vector<8xf32>
    %68 = vector.multi_reduction <add>, %67, %cst_19 [1] : vector<8x8xf32> to vector<8xf32>
    %69 = vector.shape_cast %68 : vector<8xf32> to vector<8x1xf32>
    %70 = tpu.reciprocal %69 {approx = true} : vector<8x1xf32> -> vector<8x1xf32>
    %71 = vector.broadcast %70 : vector<8x1xf32> to vector<8x8xf32>
    %72 = arith.mulf %67, %71 : vector<8x8xf32>
    %73 = arith.truncf %72 : vector<8x8xf32> to vector<8x8xbf16>
    %cst_20 = arith.constant dense<0.000000e+00> : vector<8x8xf32>
    %74 = tpu.matmul %73, %59, %cst_20 {dimension_numbers = #tpu.dot_dimension_numbers<[1], [0], [0], [1], [0, 0, 1, 1], [], []>} : vector<8x8xbf16>, vector<8x8xbf16>, vector<8x8xf32> -> vector<8x8xf32>
    %75 = vector.extract_strided_slice %9 {offsets = [0, 24], sizes = [8, 8], strides = [1, 1]} : vector<8x32xf32> to vector<8x8xf32>
    %76 = arith.truncf %75 : vector<8x8xf32> to vector<8x8xbf16>
    %77 = vector.extract_strided_slice %10 {offsets = [0, 24], sizes = [8, 8], strides = [1, 1]} : vector<8x32xf32> to vector<8x8xf32>
    %78 = arith.truncf %77 : vector<8x8xf32> to vector<8x8xbf16>
    %79 = vector.extract_strided_slice %11 {offsets = [0, 24], sizes = [8, 8], strides = [1, 1]} : vector<8x32xf32> to vector<8x8xf32>
    %80 = arith.truncf %79 : vector<8x8xf32> to vector<8x8xbf16>
    "tpu.trace_start"() <{level = 10 : i32, message = "qd,kd->qk"}> : () -> ()
    %cst_21 = arith.constant dense<0.000000e+00> : vector<8x8xf32>
    %81 = tpu.matmul %76, %78, %cst_21 {dimension_numbers = #tpu.dot_dimension_numbers<[1], [1], [0], [0], [0, 0, 1, 0], [], []>} : vector<8x8xbf16>, vector<8x8xbf16>, vector<8x8xf32> -> vector<8x8xf32>
    "tpu.trace_stop"() : () -> ()
    %82 = vector.broadcast %3 : vector<1x8xf32> to vector<8x8xf32>
    %83 = arith.addf %81, %82 : vector<8x8xf32>
    %cst_22 = arith.constant dense<0xFF800000> : vector<8xf32>
    %84 = vector.multi_reduction <maximumf>, %83, %cst_22 [1] : vector<8x8xf32> to vector<8xf32>
    %85 = vector.shape_cast %84 : vector<8xf32> to vector<8x1xf32>
    %86 = vector.broadcast %85 : vector<8x1xf32> to vector<8x8xf32>
    %87 = arith.subf %83, %86 : vector<8x8xf32>
    %88 = math.exp %87 : vector<8x8xf32>
    %cst_23 = arith.constant dense<0.000000e+00> : vector<8xf32>
    %89 = vector.multi_reduction <add>, %88, %cst_23 [1] : vector<8x8xf32> to vector<8xf32>
    %90 = vector.shape_cast %89 : vector<8xf32> to vector<8x1xf32>
    %91 = tpu.reciprocal %90 {approx = true} : vector<8x1xf32> -> vector<8x1xf32>
    %92 = vector.broadcast %91 : vector<8x1xf32> to vector<8x8xf32>
    %93 = arith.mulf %88, %92 : vector<8x8xf32>
    %94 = arith.truncf %93 : vector<8x8xf32> to vector<8x8xbf16>
    %cst_24 = arith.constant dense<0.000000e+00> : vector<8x8xf32>
    %95 = tpu.matmul %94, %80, %cst_24 {dimension_numbers = #tpu.dot_dimension_numbers<[1], [0], [0], [1], [0, 0, 1, 1], [], []>} : vector<8x8xbf16>, vector<8x8xbf16>, vector<8x8xf32> -> vector<8x8xf32>
    %96 = tpu.concatenate %32, %53, %74, %95 in 1 : vector<8x8xf32>, vector<8x8xf32>, vector<8x8xf32>, vector<8x8xf32> -> vector<8x32xf32>
    %97 = arith.truncf %96 : vector<8x32xf32> to vector<8x32xbf16>
    %c0_25 = arith.constant 0 : index
    %c0_26 = arith.constant 0 : index
    %98 = vector.load %arg5[%c0_25, %c0_26] : memref<32x32xbf16, #tpu.memory_space<vmem>>, vector<32x32xbf16>
    %cst_27 = arith.constant dense<0.000000e+00> : vector<8x32xf32>
    %99 = tpu.matmul %97, %98, %cst_27 {dimension_numbers = #tpu.dot_dimension_numbers<[1], [0], [0], [1], [0, 0, 1, 1], [], []>} : vector<8x32xbf16>, vector<32x32xbf16>, vector<8x32xf32> -> vector<8x32xf32>
    %c0_28 = arith.constant 0 : index
    %c0_29 = arith.constant 0 : index
    %100 = vector.load %arg6[%c0_28, %c0_29] : memref<1x32xf32, #tpu.memory_space<vmem>>, vector<1x32xf32>
    %101 = vector.broadcast %100 : vector<1x32xf32> to vector<8x32xf32>
    %102 = arith.addf %99, %101 : vector<8x32xf32>
    %c0_30 = arith.constant 0 : index
    %c0_31 = arith.constant 0 : index
    %c0_32 = arith.constant 0 : index
    %103 = vector.load %arg7[%c0_30, %c0_31, %c0_32] : memref<1x8x32xf32, #tpu.memory_space<vmem>>, vector<1x8x32xf32>
    %104 = vector.shape_cast %103 : vector<1x8x32xf32> to vector<8x32xf32>
    %105 = vector.shape_cast %102 : vector<8x32xf32> to vector<1x8x32xf32>
    tpu.vector_store %arg7[%c0_30, %c0_31, %c0_32], %105 {strides = array<i32>} : memref<1x8x32xf32, #tpu.memory_space<vmem>>, vector<1x8x32xf32>,
    return
  }
  func.func @transform_0(%arg0: i32) -> (i32, i32, i32) {
    %c0_i32 = arith.constant 0 : i32
    %c0_i32_0 = arith.constant 0 : i32
    %c0_i32_1 = arith.constant 0 : i32
    return %arg0, %c0_i32, %c0_i32_0 : i32, i32, i32
  }
  func.func @transform_1(%arg0: i32) -> (i32, i32, i32) {
    %c0_i32 = arith.constant 0 : i32
    %c0_i32_0 = arith.constant 0 : i32
    %c0_i32_1 = arith.constant 0 : i32
    return %arg0, %c0_i32, %c0_i32_0 : i32, i32, i32
  }
  func.func @transform_2(%arg0: i32) -> (i32, i32) {
    %c0_i32 = arith.constant 0 : i32
    %c0_i32_0 = arith.constant 0 : i32
    %c0_i32_1 = arith.constant 0 : i32
    return %c0_i32, %c0_i32_0 : i32, i32
  }
  func.func @transform_3(%arg0: i32) -> (i32, i32) {
    %c0_i32 = arith.constant 0 : i32
    %c0_i32_0 = arith.constant 0 : i32
    %c0_i32_1 = arith.constant 0 : i32
    return %c0_i32, %c0_i32_0 : i32, i32
  }
  func.func @transform_4(%arg0: i32) -> (i32, i32) {
    %c0_i32 = arith.constant 0 : i32
    %c0_i32_0 = arith.constant 0 : i32
    %c0_i32_1 = arith.constant 0 : i32
    return %c0_i32, %c0_i32_0 : i32, i32
  }
  func.func @transform_5(%arg0: i32) -> (i32, i32) {
    %c0_i32 = arith.constant 0 : i32
    %c0_i32_0 = arith.constant 0 : i32
    %c0_i32_1 = arith.constant 0 : i32
    return %c0_i32, %c0_i32_0 : i32, i32
  }
  func.func @transform_6(%arg0: i32) -> (i32, i32, i32) {
    %c0_i32 = arith.constant 0 : i32
    %c0_i32_0 = arith.constant 0 : i32
    %c0_i32_1 = arith.constant 0 : i32
    return %arg0, %c0_i32, %c0_i32_0 : i32, i32, i32
  }
}

</mosaic_0001>

<bundles_post_ra>
// kernel: _concat_attention_device.1
= control target key start
LH: loop header
LB: loop body
LE: loop exit
PB: predicated region body
PF: predicated region fallthrough
CT: control target
= control target key end

     0   :  { %s1141_s21 = smov 0   ;;  %s1258_s0 = inlined_call_operand.vmem [shape: bf16[2,8,32], index: 0, kind: input, shape index: {}]   ;;  %s1259_s1 = inlined_call_operand.vmem [shape: f32[2,1,8], index: 1, kind: input, shape index: {}]   ;;  %s1260_s2 = inlined_call_operand.vmem [shape: bf16[32,96], index: 2, kind: input, shape index: {}]   ;;  %s1261_s3 = inlined_call_operand.vmem [shape: f32[1,96], index: 3, kind: input, shape index: {}]   ;;  %s1262_s4 = inlined_call_operand.vmem [shape: bf16[32,32], index: 4, kind: input, shape index: {}]   ;;  %s1263_s5 = inlined_call_operand.vmem [shape: f32[1,32], index: 5, kind: input, shape index: {}]   ;;  %s1264_s6 = inlined_call_operand.vmem [shape: f32[2,8,32], index: 6, kind: output, shape index: {}]  }
   0x1 LB: > { %s926_s22 = sadd.s32 4294967295, %s1088_s21   ;;  %p930_p0 = scmp.ge.s32.totalorder %s1088_s21, 1  ;;  %s1088_s21 = sphi %s1141_s21, %s16_s21  }
   0x2   : > { %p219_p1 = scmp.lt.s32.totalorder %s1088_s21, 3 }
   0x4   : > { %p220_p2 = pnand %p930_p0, %p219_p1 }
   0x5   : > { %p250_p3 = scmp.lt.s32.totalorder (!%p220_p2), %s926_s22, 1  ;;  %s1092_s9 = smov (!%p220_p2), 120  }
   0x6   : > { %223 = sbr.rel (%p220_p2) target bundleno = 1420 (0x58c), region = 44  ;;  %s1093_s10 = smov (!%p220_p2), 96  }
   0x7   : > { %s1094_s11 = smov (!%p220_p2), 80   ;;  %s1095_s12 = smov (!%p220_p2), 88  }
   0x8   : > { %s1096_s13 = smov (!%p220_p2), 72   ;;  %s1097_s14 = smov (!%p220_p2), 112  }
   0x9   : > { %s1098_s15 = smov (!%p220_p2), 104   ;;  %s1099_s19 = smov (!%p220_p2), 56  }
   0xa   : > { %s1100_s20 = smov (!%p220_p2), 64   ;;  %s1101_s23 = smov (!%p220_p2), 40  }
   0xb   : > { %v1062_v0 = vld [vmem:[%s1260_s2 + $0x8] sm:$0xff]   ;;  %v1090_v1 = vmov 0.0   ;;  %v1063_v2 = vld [vmem:[%s1260_s2] sm:$0xff]   ;;  %vm1091_vm0 = vmmov 0   ;;  %s1266_s22 = smov (!%p250_p3, %s926_s22), 1  ;;  %vm287_vm1 = vcmask 261120  }
   0xc   : > { %974 = vmatprep.subr.bf16.mxu0 %v1090_v1  ;;  %982 = vmatprep.subr.bf16.mxu1 %v1090_v1  ;;  %s931_s27 = sshll.u32 %s1266_s22, 2  ;;  %v933_v4 = vld [vmem:[%s1261_s3] ss:$0 sm:$0xff]  ;;  %vm341_vm2 = vcmask 64512   ;;  %s256_s18 = scalar_lea.vmem %s1259_s1, %s1266_s22  ;;  %vm405_vm3 = vcmask 1043456   ;;  %vm792_vm4 = vcmask 130048  }
   0xd   : > { %975 = vmatpush3.bf16.msra.mxu0 %v1062_v0  ;;  %978 = vmatprep.mubr.msk.bf16.mxu0 %vm1091_vm0, %v1090_v1  ;;  %s253_s30 = scalar_lea.vmem %s1258_s0, %s931_s27  ;;  %v937_v22 = vld [vmem:[%s256_s18] ss:$0 sm:$0xff]  ;;  %s1102_s24 = smov 48   ;;  %vm794_vm5 = vcmask 195584  }
   0xe   : > { %976 = vmatprep.subr.bf16.mxu0 %v1090_v1  ;;  %984 = vmatprep.mubr.msk.bf16.mxu1 %vm1091_vm0, %v1090_v1  ;;  %v262_v3 = vld [vmem:[%s253_s30] sm:$0xf]  ;;  %s1103_s25 = smov 8   ;;  %s1104_s30 = smov 16  }
   0xf   : > { %s1105_s7 = smov 24   ;;  %s932_s8 = sshll.u32 %s1266_s22, 3 }
  0x11   : > { %977 = vmatpush3.bf16.msra.mxu0 %v1063_v2 }
  0x12   : > { %988 = vmatprep.subr.bf16.mxu0 %v1090_v1 }
  0x14   : > { %979 = vmatmul.mubr.msk.bf16.vlgmr.msra.gmra.mxu0 %vm287_vm1, %v262_v3 }
  0x15   : > { %990 = vmatprep.mubr.msk.bf16.mxu0 %vm1091_vm0, %v1090_v1 }
  0xd4   : > { %v325_v5 = vpop.f32.mrf.mxu0 }
  0xd5   : > { %v326_v6 = vadd.f32 %v933_v4, %v325_v5 }
  0xd6   : > { %v980_v7 = vpop.f32.mrf.mxu0 }
  0xd7   : > { %v1175_v8 = vpack.c.bf16 %v326_v6, %v326_v6 }
  0xd8   : > { %v328_v9 = vpop.f32.mrf.mxu0 }
  0xd9   : > { %449 = vrot.lane.b32.xlu1 %v1175_v8, %s1092_s9  ;;  %339 = vrot.lane.b32.xlu0 %v1175_v8, %s1093_s10 }
  0xda   : > { %v981_v10 = vpop.f32.mrf.mxu0 }
  0xdd   : > { %561 = vrot.lane.b32.xlu1 %v1175_v8, %s1094_s11  ;;  %451 = vrot.lane.b32.xlu0 %v1175_v8, %s1095_s12 }
  0xe1   : > { %671 = vrot.lane.b32.xlu1 %v1175_v8, %s1096_s13  ;;  %559 = vrot.lane.b32.xlu0 %v1175_v8, %s1097_s14  ;;  %s260_s13 = scalar_lea.vmem %s1264_s6, %s932_s8 }
  0xe5   : > { %669 = vrot.lane.b32.xlu0 %v1175_v8, %s1098_s15 }
 0x14b   : > { %v340_v11 = vpop.permute.xlu0 %339  ;;  %v450_v14 = vpop.permute.xlu1 %449 }
 0x14c   : > { %v346_v12 = vsel %vm341_vm2, %v340_v11, 0 }
 0x14d   : > { %983 = vmatpush3.bf16.xpose.msra.mxu1 %v346_v12 }
 0x14e   : > { %994 = vmatprep.subr.bf16.mxu1 %v1090_v1 }
 0x14f   : > { %v452_v13 = vpop.permute.xlu0 %451  ;;  %v562_v16 = vpop.permute.xlu1 %561 }
 0x150   : > { %v457_v15 = vsel %vm341_vm2, %v452_v13, 0  ;;  %v567_v17 = vsel %vm341_vm2, %v562_v16, 0 }
 0x153   : > { %v672_v18 = vpop.permute.xlu1 %671  ;;  %v560_v19 = vpop.permute.xlu0 %559 }
 0x154   : > { %985 = vmatmul.mubr.msk.bf16.vlgmr.msra.gmra.mxu1 %vm341_vm2, %v1175_v8  ;;  %v677_v20 = vsel %vm341_vm2, %v672_v18, 0 }
 0x155   : > { %995 = vmatpush3.bf16.xpose.msra.mxu1 %v457_v15  ;;  %996 = vmatprep.mubr.msk.bf16.mxu1 %vm1091_vm0, %v1090_v1 }
 0x156   : > { %1006 = vmatprep.subr.bf16.mxu1 %v1090_v1 }
 0x157   : > { %v670_v21 = vpop.permute.xlu0 %669 }
 0x15c   : > { %997 = vmatmul.mubr.msk.bf16.vlgmr.msra.gmra.mxu1 %vm341_vm2, %v450_v14 }
 0x15d   : > { %1007 = vmatpush3.bf16.xpose.msra.mxu1 %v567_v17  ;;  %1008 = vmatprep.mubr.msk.bf16.mxu1 %vm1091_vm0, %v1090_v1 }
 0x15e   : > { %1018 = vmatprep.subr.bf16.mxu1 %v1090_v1 }
 0x164   : > { %1009 = vmatmul.mubr.msk.bf16.vlgmr.msra.gmra.mxu1 %vm341_vm2, %v560_v19 }
 0x165   : > { %1019 = vmatpush3.bf16.xpose.msra.mxu1 %v677_v20  ;;  %1020 = vmatprep.mubr.msk.bf16.mxu1 %vm1091_vm0, %v1090_v1 }
 0x166   : > { %1030 = vmatprep.subr.bf16.mxu1 %v1090_v1 }
 0x16c   : > { %1021 = vmatmul.mubr.msk.bf16.vlgmr.msra.gmra.mxu1 %vm341_vm2, %v670_v21 }
 0x16d   : > { %1034 = vmatprep.mubr.msk.bf16.mxu1 %vm1091_vm0, %v1090_v1 }
 0x214   : > { %v382_v23 = vpop.f32.mrf.mxu1 }
 0x215   : > { %v383_v24 = vadd.f32 %v937_v22, %v382_v23 }
 0x216   : > { %v986_v25 = vpop.f32.mrf.mxu1 }
 0x217   : > { %v388_v26 = vsel %vm341_vm2, %v383_v24, -inf }
 0x218   : > { %389 = vmax.xlane.f32.xlu1 %v388_v26  ;;  %v385_v27 = vpop.f32.mrf.mxu1 }
 0x21a   : > { %v987_v28 = vpop.f32.mrf.mxu1 }
 0x21c   : > { %v493_v29 = vpop.f32.mrf.mxu1 }
 0x21d   : > { %v494_v30 = vadd.f32 %v937_v22, %v493_v29 }
 0x21e   : > { %v998_v31 = vpop.f32.mrf.mxu1 }
 0x21f   : > { %v499_v32 = vsel %vm341_vm2, %v494_v30, -inf }
 0x220   : > { %500 = vmax.xlane.f32.xlu0 %v499_v32  ;;  %v496_v33 = vpop.f32.mrf.mxu1 }
 0x222   : > { %v999_v34 = vpop.f32.mrf.mxu1 }
 0x224   : > { %v603_v35 = vpop.f32.mrf.mxu1 }
 0x225   : > { %v604_v36 = vadd.f32 %v937_v22, %v603_v35 }
 0x226   : > { %v1010_v37 = vpop.f32.mrf.mxu1 }
 0x227   : > { %v609_v38 = vsel %vm341_vm2, %v604_v36, -inf  ;;  %v1065_v37 = vld [vmem:[%s1262_s4] sm:$0xff]  }
 0x228   : > { %610 = vmax.xlane.f32.xlu0 %v609_v38  ;;  %v606_v39 = vpop.f32.mrf.mxu1 }
 0x22a   : > { %v1011_v40 = vpop.f32.mrf.mxu1 }
 0x22c   : > { %v713_v41 = vpop.f32.mrf.mxu1 }
 0x22d   : > { %v714_v42 = vadd.f32 %v937_v22, %v713_v41 }
 0x22e   : > { %v1022_v43 = vpop.f32.mrf.mxu1 }
 0x22f   : > { %v719_v44 = vsel %vm341_vm2, %v714_v42, -inf }
 0x230   : > { %720 = vmax.xlane.f32.xlu1 %v719_v44  ;;  %v716_v45 = vpop.f32.mrf.mxu1 }
 0x232   : > { %v1023_v46 = vpop.f32.mrf.mxu1 }
 0x2a1   : > { %v390_v47 = vpop.xlane.xlu1 %389 }
 0x2a2   : > { %v391_v48 = vsub.f32 %v383_v24, %v390_v47 }
 0x2a4   : > { %v392_v49 = vmul.f32 1.442695, %v391_v48 }
 0x2a6   : > { %1066 = vpow2.f32 %v392_v49 }
 0x2a9   : > { %v501_v50 = vpop.xlane.xlu0 %500 }
 0x2aa   : > { %v502_v51 = vsub.f32 %v494_v30, %v501_v50 }
 0x2ac   : > { %v503_v52 = vmul.f32 1.442695, %v502_v51 }
 0x2ae   : > { %1068 = vpow2.f32 %v503_v52  ;;  %v946_v52 = vld [vmem:[%s1263_s5] ss:$0 sm:$0xff] }
 0x2b1   : > { %v611_v53 = vpop.xlane.xlu0 %610 }
 0x2b2   : > { %v612_v54 = vsub.f32 %v604_v36, %v611_v53  ;;  %v1064_v36 = vld [vmem:[%s1262_s4 + $0x8] sm:$0xff]  }
 0x2b3   : > { %v1067_v55 = vpop.eup %1066  ;;  %1031 = vmatpush3.bf16.msra.mxu1 %v1064_v36 }
 0x2b4   : > { %v613_v56 = vmul.f32 1.442695, %v612_v54  ;;  %v394_v57 = vsel %vm341_vm2, %v1067_v55, 0.0  ;;  %1032 = vmatprep.subr.bf16.mxu1 %v1090_v1 }
 0x2b5   : > { %395 = vadd.xlane.f32.xlu0 %v394_v57 }
 0x2b6   : > { %1070 = vpow2.f32 %v613_v56 }
 0x2b7   : > { %1033 = vmatpush3.bf16.msra.mxu1 %v1065_v37 }
 0x2b9   : > { %v721_v62 = vpop.xlane.xlu1 %720 }
 0x2ba   : > { %v722_v63 = vsub.f32 %v714_v42, %v721_v62 }
 0x2bb   : > { %v1069_v58 = vpop.eup %1068 }
 0x2bc   : > { %v505_v59 = vsel %vm341_vm2, %v1069_v58, 0.0  ;;  %v723_v0 = vmul.f32 1.442695, %v722_v63 }
 0x2bd   : > { %506 = vadd.xlane.f32.xlu1 %v505_v59 }
 0x2be   : > { %1072 = vpow2.f32 %v723_v0 }
 0x2c3   : > { %v1071_v60 = vpop.eup %1070 }
 0x2c4   : > { %v615_v61 = vsel %vm341_vm2, %v1071_v60, 0.0 }
 0x2c5   : > { %616 = vadd.xlane.f32.xlu0 %v615_v61 }
 0x2cb   : > { %v1073_v2 = vpop.eup %1072 }
 0x2cc   : > { %v725_v3 = vsel %vm341_vm2, %v1073_v2, 0.0 }
 0x2ce   : > { %511 = vrot.lane.b32.xlu1 %v1175_v8, %s1099_s19 }
 0x2db   : > { %400 = vrot.lane.b32.xlu0 %v1175_v8, %s1100_s20 }
 0x2df   : > { %731 = vrot.lane.b32.xlu0 %v1175_v8, %s1101_s23 }
 0x2f2   : > { %726 = vadd.xlane.f32.xlu1 %v725_v3 }
 0x303   : > { %621 = vrot.lane.b32.xlu1 %v1175_v8, %s1102_s24 }
 0x33e   : > { %v396_v4 = vpop.xlane.xlu0 %395 }
 0x33f   : > { %1074 = vrcp.f32 %v396_v4 }
 0x346   : > { %v507_v5 = vpop.xlane.xlu1 %506 }
 0x347   : > { %1076 = vrcp.f32 %v507_v5 }
 0x34a   : > { %v512_v12 = vpop.permute.xlu1 %511 }
 0x34b   : > { %v517_v15 = vsel %vm405_vm3, %v512_v12, 0 }
 0x34c   : > { %v1075_v6 = vpop.eup %1074 }
 0x34d   : > { %v398_v9 = vmul.f32 %v1075_v6, %v1067_v55 }
 0x34e   : > { %v617_v7 = vpop.xlane.xlu0 %616 }
 0x34f   : > { %v399_v13 = vpack.c.bf16 %v398_v9, %v398_v9  ;;  %1078 = vrcp.f32 %v617_v7 }
 0x352   : > { %v401_v10 = vpop.permute.xlu0 %400 }
 0x353   : > { %v407_v11 = vsel %vm405_vm3, %v401_v10, 0 }
 0x354   : > { %989 = vmatpush3.bf16.msra.mxu0 %v407_v11  ;;  %v1077_v14 = vpop.eup %1076 }
 0x355   : > { %1000 = vmatprep.subr.bf16.mxu0 %v1090_v1  ;;  %v509_v8 = vmul.f32 %v1077_v14, %v1069_v58 }
 0x356   : > { %v732_v22 = vpop.permute.xlu0 %731 }
 0x357   : > { %991 = vmatmul.mubr.msk.bf16.vlgmr.msra.gmra.mxu0 %vm341_vm2, %v399_v13  ;;  %v510_v16 = vpack.c.bf16 %v509_v8, %v509_v8  ;;  %v737_v24 = vsel %vm405_vm3, %v732_v22, 0 }
 0x358   : > { %1001 = vmatpush3.bf16.msra.mxu0 %v517_v15  ;;  %1002 = vmatprep.mubr.msk.bf16.mxu0 %vm1091_vm0, %v1090_v1 }
 0x359   : > { %1012 = vmatprep.subr.bf16.mxu0 %v1090_v1 }
 0x35c   : > { %v1079_v17 = vpop.eup %1078 }
 0x35d   : > { %v619_v19 = vmul.f32 %v1079_v17, %v1071_v60 }
 0x35f   : > { %1003 = vmatmul.mubr.msk.bf16.vlgmr.msra.gmra.mxu0 %vm341_vm2, %v510_v16  ;;  %v620_v23 = vpack.c.bf16 %v619_v19, %v619_v19 }
 0x360   : > { %1014 = vmatprep.mubr.msk.bf16.mxu0 %vm1091_vm0, %v1090_v1 }
 0x37b   : > { %v727_v18 = vpop.xlane.xlu1 %726 }
 0x37c   : > { %1080 = vrcp.f32 %v727_v18 }
 0x37f   : > { %v622_v20 = vpop.permute.xlu1 %621 }
 0x380   : > { %v627_v21 = vsel %vm405_vm3, %v622_v20, 0 }
 0x381   : > { %1013 = vmatpush3.bf16.msra.mxu0 %v627_v21 }
 0x382   : > { %1024 = vmatprep.subr.bf16.mxu0 %v1090_v1 }
 0x384   : > { %1015 = vmatmul.mubr.msk.bf16.vlgmr.msra.gmra.mxu0 %vm341_vm2, %v620_v23 }
 0x385   : > { %1025 = vmatpush3.bf16.msra.mxu0 %v737_v24  ;;  %1026 = vmatprep.mubr.msk.bf16.mxu0 %vm1091_vm0, %v1090_v1 }
 0x389   : > { %v1081_v25 = vpop.eup %1080 }
 0x38a   : > { %v729_v26 = vmul.f32 %v1081_v25, %v1073_v2 }
 0x38c   : > { %v730_v27 = vpack.c.bf16 %v729_v26, %v729_v26 }
 0x38e   : > { %1027 = vmatmul.mubr.msk.bf16.vlgmr.msra.gmra.mxu0 %vm341_vm2, %v730_v27 }
 0x417   : > { %v443_v28 = vpop.f32.mrf.mxu0 }
 0x419   : > { %v992_v29 = vpop.f32.mrf.mxu0 }
 0x41b   : > { %v446_v30 = vpop.f32.mrf.mxu0 }
 0x41d   : > { %v993_v31 = vpop.f32.mrf.mxu0 }
 0x41f   : > { %v553_v32 = vpop.f32.mrf.mxu0 }
 0x420   : > { %780 = vrot.lane.b32.xlu1 %v553_v32, %s1103_s25 }
 0x421   : > { %v1004_v33 = vpop.f32.mrf.mxu0 }
 0x423   : > { %v556_v34 = vpop.f32.mrf.mxu0 }
 0x425   : > { %v1005_v35 = vpop.f32.mrf.mxu0 }
 0x444   : > { %v663_v38 = vpop.f32.mrf.mxu0 }
 0x445   : > { %784 = vrot.lane.b32.xlu0 %v663_v38, %s1104_s30 }
 0x446   : > { %v1016_v39 = vpop.f32.mrf.mxu0 }
 0x448   : > { %v666_v40 = vpop.f32.mrf.mxu0 }
 0x44a   : > { %v1017_v41 = vpop.f32.mrf.mxu0 }
 0x44e   : > { %v773_v42 = vpop.f32.mrf.mxu0 }
 0x44f   : > { %788 = vrot.lane.b32.xlu1 %v773_v42, %s1105_s7 }
 0x450   : > { %v1028_v43 = vpop.f32.mrf.mxu0 }
 0x452   : > { %v776_v44 = vpop.f32.mrf.mxu0 }
 0x454   : > { %v1029_v45 = vpop.f32.mrf.mxu0 }
 0x492   : > { %v781_v46 = vpop.permute.xlu1 %780 }
 0x493   : > { %v791_v47 = vsel %vm341_vm2, %v443_v28, %v781_v46 }
 0x4b7   : > { %v785_v1 = vpop.permute.xlu0 %784 }
 0x4b8   : > { %v793_v48 = vsel %vm792_vm4, %v791_v47, %v785_v1 }
 0x4c1   : > { %v789_v49 = vpop.permute.xlu1 %788 }
 0x4c2   : > { %v795_v50 = vsel %vm794_vm5, %v793_v48, %v789_v49 }
 0x4c3   : > { %v796_v51 = vpack.c.bf16 %v795_v50, %v795_v50 }
 0x4c5   : > { %1035 = vmatmul.mubr.msk.bf16.vlgmr.msra.gmra.mxu1 %vm287_vm1, %v796_v51 }
 0x585   : > { %v857_v53 = vpop.f32.mrf.mxu1 }
 0x586   : > { %v858_v54 = vadd.f32 %v946_v52, %v857_v53 }
 0x587   : > { %v1036_v55 = vpop.f32.mrf.mxu1 }
 0x588   : > { %863 = vst.msk [vmem:[%s260_s13] sm:$0xff] %vm287_vm1, %v858_v54 }
 0x589   : > { %v860_v56 = vpop.f32.mrf.mxu1 }
 0x58b   : > { %v1037_v57 = vpop.f32.mrf.mxu1 }
 0x58c PF: > { %s16_s21 = sadd.s32 1, %s1088_s21  }
 0x58d   : > { %p13_p4 = scmp.ge.s32.totalorder %s16_s21, 4  }
 0x58f   :  { %15 = sbr.rel (!%p13_p4) target bundleno = 1 (0x1), region = 77 }

</bundles_post_ra>
